<compile_context>
chip_gen: v6e
topology: v6e:2x2x1
jax: 0.10.0
libtpu: 0.0.40
codegen_flags: <defaults>
</compile_context>

<pallas_src>
import math

import jax
import jax.numpy as jnp
from jax.experimental import pallas as pl
from jax.experimental.pallas import tpu as pltpu


_MIB = 1024 * 1024
_RESIDENT_VMEM_BUDGET = 28 * _MIB      # sizing budget for the resident path
_DEFAULT_RESIDENT_WEIGHT = 8 * _MIB    # max single-copy weight kept resident


def _cdiv(a, b):
    return (a + b - 1) // b


def _round_up(x, m):
    return _cdiv(x, m) * m


def _sublane_multiple(dtype):
    # f32 -> 8 rows / sublane-tile, bf16 -> 16, int8/fp8 -> 32.
    return {4: 8, 2: 16, 1: 32}.get(jnp.dtype(dtype).itemsize, 8)


def _vmem_limit(est_bytes):
    # <= 48 MiB so it also fits v7x's 64 MiB per-TensorCore VMEM; v5e/v6e
    # (128 MiB physical) have ample headroom.
    return int(min(48 * _MIB, max(32 * _MIB, est_bytes * 5 // 4)))


# ---------------------------------------------------------------------------
# Kernels
# ---------------------------------------------------------------------------

def _linear_noacc_kernel(x_ref, w_ref, b_ref, o_ref):
    """Single-K-step tile: y = x @ w + b, no scratch accumulator."""
    acc = jnp.dot(x_ref[...], w_ref[...], preferred_element_type=jnp.float32)
    o_ref[...] = (acc + b_ref[...].astype(jnp.float32)).astype(o_ref.dtype)


def _linear_acc_kernel(x_ref, w_ref, b_ref, o_ref, acc_ref):
    """K-innermost reduction with an f32 VMEM accumulator."""
    k = pl.program_id(2)

    @pl.when(k == 0)
    def _():
        acc_ref[...] = jnp.zeros_like(acc_ref)

    acc_ref[...] += jnp.dot(x_ref[...], w_ref[...],
                            preferred_element_type=jnp.float32)

    @pl.when(k == pl.num_programs(2) - 1)
    def _():
        o_ref[...] = (acc_ref[...] + b_ref[...].astype(jnp.float32)
                      ).astype(o_ref.dtype)


# ---------------------------------------------------------------------------
# Tiling selection
# ---------------------------------------------------------------------------

def _pick_resident_tiling(m, in_dim, out_dim, in_bpe, w_bpe, out_bpe, b_bpe,
                          tm_max, sub):
    """Pick (tm, tn, n_blocks, vmem_estimate) for the weight-resident path,
    or return None if it does not fit the VMEM budget."""

    def est(tm, tn):
        # Double-buffered inputs/outputs (Pallas allocates 2 buffers each).
        return 2 * (in_dim * tn * w_bpe + tm * in_dim * in_bpe
                    + tm * tn * out_bpe + tn * b_bpe)

    def pick_tm(tn):
        for cand in (512, 256, 128, 64, 32, 16, 8):
            if cand > tm_max or cand % sub:
                continue
            tm = m if m <= cand else cand   # full-dim block is always legal
            if est(tm, tn) <= _RESIDENT_VMEM_BUDGET:
                return tm
        return None

    tn = out_dim
    tm = pick_tm(tn)
    if tm is None:
        return None
    n_blocks = 1
    # Megacore (v7x has 2 TensorCores): if the whole problem collapses to a
    # single M block, split N in two so both cores get a "parallel" program.
    if _cdiv(m, tm) == 1 and out_dim >= 256:
        tn_split = _round_up(_cdiv(out_dim, 2), 128)
        tm_split = pick_tm(tn_split)
        if tm_split is not None:
            tm, tn, n_blocks = tm_split, tn_split, _cdiv(out_dim, tn_split)
    return tm, tn, n_blocks, est(tm, tn)


def _pick_tk(in_dim, tk_max):
    """K tile: full K if it fits, else prefer a 128-aligned divisor of in_dim
    (no padding needed), else the largest 128-aligned tile <= tk_max."""
    if in_dim <= tk_max:
        return in_dim
    fallback = None
    for t in range(tk_max - tk_max % 128, 127, -128):
        if fallback is None:
            fallback = t
        if in_dim % t == 0:
            return t
    return fallback if fallback is not None else 128


# ---------------------------------------------------------------------------
# Public wrapper
# ---------------------------------------------------------------------------

def prepare_linear_norm_params(weight_t, bias, compute_dtype):
    """Hoist the per-call weight cast out of the hot path (inference):
    store weight_t in compute_dtype once; keep bias in f32 for the epilogue."""
    return weight_t.astype(compute_dtype), bias


def linear_norm_pallas(x, weight_t, bias=None, *, compute_dtype=None,
                       tm_max=512, tn_max=512, tk_max=1024,
                       max_resident_weight_bytes=_DEFAULT_RESIDENT_WEIGHT):
    """y = x @ weight_t + bias.

    x:        [..., in_dim]
    weight_t: [in_dim, out_dim]   (transpose of torch's [out_dim, in_dim])
    bias:     [out_dim] or None
    compute_dtype: optional dtype (e.g. jnp.bfloat16) for the MXU operands
                   (recommended on v6e/v7x); accumulation stays float32 and
                   the output keeps x.dtype.
    """
    in_dim, out_dim = weight_t.shape
    orig_shape = x.shape
    out_dtype = x.dtype

    m = 1
    for s in orig_shape[:-1]:
        m *= s
    x2d = x.reshape(m, in_dim)

    if bias is None:
        bias = jnp.zeros((out_dim,), jnp.float32)

    if compute_dtype is not None:
        cdt = jnp.dtype(compute_dtype)
        if x2d.dtype != cdt:
            x2d = x2d.astype(cdt)
        if weight_t.dtype != cdt:          # no-op if weights were pre-cast
            weight_t = weight_t.astype(cdt)

    in_bpe = jnp.dtype(x2d.dtype).itemsize
    w_bpe = jnp.dtype(weight_t.dtype).itemsize
    out_bpe = jnp.dtype(out_dtype).itemsize
    b2d = bias.reshape(1, out_dim)
    b_bpe = jnp.dtype(b2d.dtype).itemsize
    sub = _sublane_multiple(x2d.dtype)

    # -------------------- Path A: weight-resident ---------------------------
    tiling = None
    if in_dim * out_dim * w_bpe <= max_resident_weight_bytes:
        tiling = _pick_resident_tiling(m, in_dim, out_dim, in_bpe, w_bpe,
                                       out_bpe, b_bpe, tm_max, sub)

    if tiling is not None:
        tm, tn, n_blocks, est_vmem = tiling
        m_blocks = _cdiv(m, tm)
        # N outer / M inner so the weight block is DMA'd only when N changes.
        grid = (n_blocks, m_blocks)
        bytes_accessed = (m * in_dim * in_bpe * n_blocks
                          + in_dim * out_dim * w_bpe
                          + out_dim * b_bpe * n_blocks
                          + m * out_dim * out_bpe)
        out = pl.pallas_call(
            _linear_noacc_kernel,
            out_shape=jax.ShapeDtypeStruct((m, out_dim), out_dtype),
            grid_spec=pltpu.PrefetchScalarGridSpec(
                num_scalar_prefetch=0,
                grid=grid,
                in_specs=[
                    pl.BlockSpec((tm, in_dim), lambda j, i: (i, 0)),   # x
                    pl.BlockSpec((in_dim, tn), lambda j, i: (0, j)),   # W^T
                    pl.BlockSpec((1, tn), lambda j, i: (0, j)),        # bias
                ],
                out_specs=pl.BlockSpec((tm, tn), lambda j, i: (i, j)),
            ),
            compiler_params=pltpu.CompilerParams(
                dimension_semantics=("parallel", "parallel"),
                vmem_limit_bytes=_vmem_limit(est_vmem),
            ),
            cost_estimate=pl.CostEstimate(
                flops=2 * m * in_dim * out_dim, transcendentals=0,
                bytes_accessed=int(bytes_accessed)),
        )(x2d, weight_t, b2d)
        return out.reshape(*orig_shape[:-1], out_dim)

    # -------------------- Path B: tiled 3-D (M, N, K) -----------------------
    tm = m if m <= tm_max else tm_max
    tn = out_dim if out_dim <= tn_max else tn_max
    tk = _pick_tk(in_dim, tk_max)
    k_pad = _round_up(in_dim, tk)
    if k_pad != in_dim:
        # K zero-padding is REQUIRED for correctness of the reduction
        # (garbage K columns would pollute every output element).
        x2d = jnp.pad(x2d, ((0, 0), (0, k_pad - in_dim)))
        weight_t = jnp.pad(weight_t, ((0, k_pad - in_dim), (0, 0)))

    m_blocks = _cdiv(m, tm)
    n_blocks = _cdiv(out_dim, tn)
    k_blocks = k_pad // tk
    grid = (m_blocks, n_blocks, k_blocks)

    est_vmem = 2 * (tm * tk * in_bpe + tk * tn * w_bpe + tn * b_bpe
                    + tm * tn * out_bpe)
    if k_blocks > 1:
        kernel = _linear_acc_kernel
        scratch = [pltpu.VMEM((tm, tn), jnp.float32)]
        est_vmem += tm * tn * 4
    else:
        # Single K step: no zero-init / RMW / copy-out of an accumulator.
        kernel = _linear_noacc_kernel
        scratch = []

    bytes_accessed = (m * k_pad * in_bpe * n_blocks         # x re-read per N
                      + k_pad * out_dim * w_bpe * m_blocks  # W re-read per M
                      + out_dim * b_bpe * m_blocks * n_blocks
                      + m * out_dim * out_bpe)

    out = pl.pallas_call(
        kernel,
        out_shape=jax.ShapeDtypeStruct((m, out_dim), out_dtype),
        grid_spec=pltpu.PrefetchScalarGridSpec(
            num_scalar_prefetch=0,
            grid=grid,
            in_specs=[
                pl.BlockSpec((tm, tk), lambda i, j, k: (i, k)),   # x tile
                pl.BlockSpec((tk, tn), lambda i, j, k: (k, j)),   # W tile
                pl.BlockSpec((1, tn), lambda i, j, k: (0, j)),    # bias tile
            ],
            out_specs=pl.BlockSpec((tm, tn), lambda i, j, k: (i, j)),
            scratch_shapes=scratch,
        ),
        compiler_params=pltpu.CompilerParams(
            dimension_semantics=("parallel", "parallel", "arbitrary"),
            vmem_limit_bytes=_vmem_limit(est_vmem),
        ),
        cost_estimate=pl.CostEstimate(
            flops=2 * m * k_pad * out_dim, transcendentals=0,
            bytes_accessed=int(bytes_accessed)),
    )(x2d, weight_t, b2d)
    return out.reshape(*orig_shape[:-1], out_dim)


def init_linear_norm_params(key, in_dim, out_dim, w_init_gain="linear"):
    """Xavier-uniform weight (torch gain semantics) + torch.nn.Linear default
    bias init.  Returns (weight_t, bias) with weight_t = W^T [in_dim, out_dim]."""
    gains = {"linear": 1.0, "tanh": 5.0 / 3.0, "relu": math.sqrt(2.0),
             "sigmoid": 1.0}
    gain = gains[w_init_gain]
    limit = gain * math.sqrt(6.0 / (in_dim + out_dim))
    k_w, k_b = jax.random.split(key)
    w = jax.random.uniform(k_w, (out_dim, in_dim), jnp.float32, -limit, limit)
    b_limit = 1.0 / math.sqrt(in_dim)
    b = jax.random.uniform(k_b, (out_dim,), jnp.float32, -b_limit, b_limit)
    return w.T, b


if __name__ == "__main__":
    key = jax.random.PRNGKey(0)
    ks = jax.random.split(key, 12)

    # --- Test 1: basic small shapes, weight-resident path (f32) ---
    batch, seq, in_dim, out_dim = 2, 8, 32, 32
    x = jax.random.normal(ks[0], (batch, seq, in_dim), jnp.float32)
    w_t, b = init_linear_norm_params(ks[1], in_dim, out_dim, "linear")
    y = jax.block_until_ready(linear_norm_pallas(x, w_t, b))
    y_ref = x @ w_t + b
    assert y.shape == (batch, seq, out_dim)
    assert jnp.allclose(y, y_ref, atol=1e-5, rtol=1e-5)

    # --- Test 2: unaligned M/N/K, no padding, partial/full-dim blocks ---
    x2 = jax.random.normal(ks[2], (3, 5, 48), jnp.float32)
    w2, b2 = init_linear_norm_params(ks[3], 48, 96, "tanh")
    y2 = jax.block_until_ready(linear_norm_pallas(x2, w2, b2))
    assert y2.shape == (3, 5, 96)
    assert jnp.allclose(y2, x2 @ w2 + b2, atol=1e-5, rtol=1e-5)

    # --- Test 3: larger K, still weight-resident (single dot, no K axis) ---
    x3 = jax.random.normal(ks[4], (2, 8, 640), jnp.float32)
    w3, b3 = init_linear_norm_params(ks[5], 640, 32, "relu")
    y3 = jax.block_until_ready(linear_norm_pallas(x3, w3, b3))
    assert y3.shape == (2, 8, 32)
    assert jnp.allclose(y3, x3 @ w3 + b3, atol=1e-4, rtol=1e-4)

    # --- Test 4: force tiled path B with K reduction + K padding + partial
    #             M/N edge blocks (accumulator kernel) ---
    x4 = jax.random.normal(ks[6], (3, 5, 600), jnp.float32)
    w4, b4 = init_linear_norm_params(ks[7], 600, 200, "linear")
    y4 = jax.block_until_ready(linear_norm_pallas(
        x4, w4, b4, max_resident_weight_bytes=0,
        tm_max=8, tn_max=128, tk_max=256))
    assert y4.shape == (3, 5, 200)
    assert jnp.allclose(y4, x4 @ w4 + b4, atol=1e-4, rtol=1e-4)

    # --- Test 5: force tiled path B with a single K step (no-acc kernel) ---
    x5 = jax.random.normal(ks[8], (2, 8, 64), jnp.float32)
    w5, b5 = init_linear_norm_params(ks[9], 64, 96, "sigmoid")
    y5 = jax.block_until_ready(linear_norm_pallas(
        x5, w5, b5, max_resident_weight_bytes=0))
    assert y5.shape == (2, 8, 96)
    assert jnp.allclose(y5, x5 @ w5 + b5, atol=1e-5, rtol=1e-5)

    # --- Test 6: single-M-block decode shape -> N split in 2 (megacore) ---
    x6 = jax.random.normal(ks[10], (2, 8, 32), jnp.float32)
    w6, b6 = init_linear_norm_params(ks[11], 32, 512, "linear")
    y6 = jax.block_until_ready(linear_norm_pallas(x6, w6, b6))
    assert y6.shape == (2, 8, 512)
    assert jnp.allclose(y6, x6 @ w6 + b6, atol=1e-5, rtol=1e-5)

    # --- Test 7: bf16 operand path with pre-cast (hoisted) weight ---
    w_bf16, b_f32 = prepare_linear_norm_params(w_t, b, jnp.bfloat16)
    y_bf16 = jax.block_until_ready(
        linear_norm_pallas(x, w_bf16, b_f32, compute_dtype=jnp.bfloat16))
    assert y_bf16.dtype == x.dtype
    assert jnp.allclose(y_bf16, y_ref, atol=5e-2, rtol=5e-2)

    print("KERNEL_OK")
</pallas_src>

<mosaic_0001>
module attributes {stable_mosaic.version = 11 : i64} {
  func.func @_linear_noacc_kernel(%arg0: i32, %arg1: i32, %arg2: memref<16x32xf32, #tpu.memory_space<vmem>>, %arg3: memref<32x32xf32, #tpu.memory_space<vmem>>, %arg4: memref<1x32xf32, #tpu.memory_space<vmem>>, %arg5: memref<16x32xf32, #tpu.memory_space<vmem>>) attributes {dimension_semantics = [#tpu.dimension_semantics<parallel>, #tpu.dimension_semantics<parallel>], iteration_bounds = array<i64: 1, 1>, scalar_prefetch = 0 : i64, scratch_operands = 0 : i64, tpu.core_type = #tpu.core_type<tc>, window_params = [{transform_indices = @transform_0, window_bounds = array<i64: 16, 32>}, {transform_indices = @transform_1, window_bounds = array<i64: 32, 32>}, {transform_indices = @transform_2, window_bounds = array<i64: 1, 32>}, {transform_indices = @transform_3, window_bounds = array<i64: 16, 32>}]} {
    %c0 = arith.constant 0 : index
    %c0_0 = arith.constant 0 : index
    %0 = vector.load %arg2[%c0, %c0_0] : memref<16x32xf32, #tpu.memory_space<vmem>>, vector<16x32xf32>
    %c0_1 = arith.constant 0 : index
    %c0_2 = arith.constant 0 : index
    %1 = vector.load %arg3[%c0_1, %c0_2] : memref<32x32xf32, #tpu.memory_space<vmem>>, vector<32x32xf32>
    %cst = arith.constant dense<0.000000e+00> : vector<16x32xf32>
    %2 = tpu.matmul %0, %1, %cst {dimension_numbers = #tpu.dot_dimension_numbers<[1], [0], [0], [1], [0, 0, 1, 1], [], []>} : vector<16x32xf32>, vector<32x32xf32>, vector<16x32xf32> -> vector<16x32xf32>
    %c0_3 = arith.constant 0 : index
    %c0_4 = arith.constant 0 : index
    %3 = vector.load %arg4[%c0_3, %c0_4] : memref<1x32xf32, #tpu.memory_space<vmem>>, vector<1x32xf32>
    %4 = vector.broadcast %3 : vector<1x32xf32> to vector<16x32xf32>
    %5 = arith.addf %2, %4 : vector<16x32xf32>
    %c0_5 = arith.constant 0 : index
    %c0_6 = arith.constant 0 : index
    %6 = vector.load %arg5[%c0_5, %c0_6] : memref<16x32xf32, #tpu.memory_space<vmem>>, vector<16x32xf32>
    tpu.vector_store %arg5[%c0_5, %c0_6], %5 {strides = array<i32>} : memref<16x32xf32, #tpu.memory_space<vmem>>, vector<16x32xf32>,
    return
  }
  func.func @transform_0(%arg0: i32, %arg1: i32) -> (i32, i32) {
    %c0_i32 = arith.constant 0 : i32
    %c0_i32_0 = arith.constant 0 : i32
    return %arg1, %c0_i32 : i32, i32
  }
  func.func @transform_1(%arg0: i32, %arg1: i32) -> (i32, i32) {
    %c0_i32 = arith.constant 0 : i32
    %c0_i32_0 = arith.constant 0 : i32
    return %c0_i32, %arg0 : i32, i32
  }
  func.func @transform_2(%arg0: i32, %arg1: i32) -> (i32, i32) {
    %c0_i32 = arith.constant 0 : i32
    %c0_i32_0 = arith.constant 0 : i32
    return %c0_i32, %arg0 : i32, i32
  }
  func.func @transform_3(%arg0: i32, %arg1: i32) -> (i32, i32) {
    %c0_i32 = arith.constant 0 : i32
    return %arg1, %arg0 : i32, i32
  }
}

</mosaic_0001>

<bundles_post_ra>
// kernel: tpu_custom_call.1
= control target key start
LH: loop header
LB: loop body
LE: loop exit
PB: predicated region body
PF: predicated region fallthrough
CT: control target
= control target key end

     0   :  { %8 = vsyncpa [#allocation3], 0  ;;  %s299_s0 = inlined_call_operand.hbm [shape: f32[16,32], index: 0, kind: input, shape index: {}]   ;;  %s300_s1 = inlined_call_operand.hbm [shape: f32[32,32], index: 1, kind: input, shape index: {}]   ;;  %s301_s2 = inlined_call_operand.vmem [shape: f32[1,32], index: 2, kind: input, shape index: {}]   ;;  %s302_s3 = inlined_call_operand.hbm [shape: f32[16,32], index: 3, kind: output, shape index: {}]  }
   0x1   :  { %9 = vsyncpa [#allocation6], 0 }
   0x2   :  { %10 = vsyncpa [#allocation4], 0  ;;  %s249_s12 = smov [#allocation2]  }
   0x3   :  { %s16_s13 = sshll.u32 %s249_s12, 4  ;;  %s17_s13 = int_to_ptr.vmem [resolvable:$true] %s16_s13 }
   0x4   :  { %s191_s14 = scalar_lea.vmem %s17_s13, 256  ;;  %p196_p1 = scmp.lt.s32.totalorder %s17_s13, %s17_s13 }
   0x5   :  { %p192_p0 = scmp.ne.s32.totalorder %s17_s13, %s191_s14  ;;  %p197_p2 = scmp.lt.s32.totalorder %s191_s14, %s191_s14 }
   0x7   :  { %p198_p3 = por %p197_p2, %p196_p1 }
   0x9   :  { %p199_p4 = pnand %p198_p3, %p192_p0 }
   0xb   :  { %202 = shalt.err (!%p199_p4)
}
   0xc   :  { %s250_s15 = smov 128   ;;  %s251_s16 = smov 8  }
   0xd   :  { %22 = dma.hbm_to_vmem [thread:$0]  %s299_s0, 256, %s17_s13, [#allocation3], %s250_s15, %s250_s15, %s251_s16  }
   0xe   :  { %s252_s19 = smov [#allocation5]  }
   0xf   :  { %s28_s20 = sshll.u32 %s252_s19, 4  ;;  %s29_s20 = int_to_ptr.vmem [resolvable:$true] %s28_s20 }
  0x10   :  { %s211_s21 = scalar_lea.vmem %s29_s20, 512  ;;  %p216_p6 = scmp.lt.s32.totalorder %s29_s20, %s29_s20 }
  0x11   :  { %p212_p5 = scmp.ne.s32.totalorder %s29_s20, %s211_s21  ;;  %p217_p7 = scmp.lt.s32.totalorder %s211_s21, %s211_s21 }
  0x13   :  { %p218_p8 = por %p217_p7, %p216_p6 }
  0x15   :  { %p219_p9 = pnand %p218_p8, %p212_p5 }
  0x17   :  { %222 = shalt.err (!%p219_p9)
}
  0x18   :  { %34 = dma.hbm_to_vmem [thread:$0]  %s300_s1, 512, %s29_s20, [#allocation6], %s250_s15, %s250_s15, %s251_s16  }
  0x19   :  { %243 = dma.done.wait [#allocation3], 256  }
  0x1a   :  { %244 = vsyncadd [#allocation3], 4294967040 }
  0x1b   :  { %245 = dma.done.wait [#allocation6], 512  }
  0x1c   :  { %246 = vsyncadd [#allocation6], 4294966784  ;;  %vm56_vm0 = vcmask 261120   ;;  %v48_v0 = vld [vmem:[#allocation5 + $0x18] sm:$0xff]  ;;  %v47_v1 = vld [vmem:[#allocation5 + $0x10] sm:$0xff]  ;;  %s253_s24 = smov [#allocation7]  }
  0x1d   :  { %167 = vmatprep.subr.mxu0 %v48_v0  ;;  %v43_v2 = vld [vmem:[#allocation2] sm:$0xff]  ;;  %v46_v3 = vld [vmem:[#allocation5 + $0x8] sm:$0xff]  ;;  %v45_v4 = vld [vmem:[#allocation5] sm:$0xff]  ;;  %s145_s25 = sshll.u32 %s253_s24, 4  ;;  %s146_s25 = int_to_ptr.vmem [resolvable:$true] %s145_s25 }
  0x1e   :  { %168 = vmatpush3.msra.mxu0 %v48_v0  ;;  %175 = vmatprep.mubr.msk.f32.mxu0 %vm56_vm0, %v43_v2  ;;  %v44_v5 = vld [vmem:[#allocation2 + $0x8] sm:$0xff]  ;;  %v158_v6 = vld [vmem:[%s301_s2] ss:$0 sm:$0xff]  ;;  %s223_s26 = scalar_lea.vmem %s146_s25, 256  ;;  %p228_p11 = scmp.lt.s32.totalorder %s146_s25, %s146_s25 }
  0x1f   :  { %169 = vmatprep.subr.mxu0 %v47_v1  ;;  %p224_p10 = scmp.ne.s32.totalorder %s146_s25, %s223_s26  ;;  %p229_p12 = scmp.lt.s32.totalorder %s223_s26, %s223_s26 }
  0x20   :  { %170 = vmatpush3.msra.mxu0 %v47_v1 }
  0x21   :  { %171 = vmatprep.subr.mxu0 %v46_v3  ;;  %p230_p13 = por %p229_p12, %p228_p11 }
  0x22   :  { %172 = vmatpush3.msra.mxu0 %v46_v3 }
  0x23   :  { %173 = vmatprep.subr.mxu0 %v45_v4  ;;  %p231_p0 = pnand %p230_p13, %p224_p10 }
  0x24   :  { %174 = vmatpush3.msra.mxu0 %v45_v4 }
  0x25   :  { %176 = vmatmul.mubr.msk.f32.vlgmr.msra.gmra.mxu0 %vm56_vm0, %v44_v5 }
  0xe5   :  { %v177_v7 = vpop.f32.mrf.mxu0 }
  0xe6   :  { %v135_v8 = vadd.f32 %v177_v7, %v158_v6 }
  0xe7   :  { %v129_v9 = vpop.f32.mrf.mxu0 }
  0xe8   :  { %139 = vst.msk [vmem:[#allocation7 + $0x8] sm:$0xff] %vm56_vm0, %v135_v8  ;;  %v130_v10 = vadd.f32 %v158_v6, %v129_v9 }
  0xea   :  { %138 = vst.msk [vmem:[#allocation7] sm:$0xff] %vm56_vm0, %v130_v10 }
  0xeb   :  { %234 = shalt.err (!%p231_p0)
}
  0xec   :  { %151 = dma.vmem_to_hbm [thread:$0]  %s146_s25, 256, %s302_s3, [#allocation4], %s250_s15, %s250_s15, %s251_s16  }
  0xed   :  { %247 = dma.done.wait [#allocation4], 256  }
  0xee   :  { %248 = vsyncadd [#allocation4], 4294967040 }
  0xef   :  { %155 = vsyncpa [#allocation3], 1 }
  0xf0   :  { %156 = vsyncpa [#allocation6], 1 }
  0xf1   :  { %157 = vsyncpa [#allocation4], 1 }

</bundles_post_ra>
